<compile_context>
chip_gen: v7x
topology: tpu7x:2x2x1
jax: 0.10.0
libtpu: 0.0.40
codegen_flags: <defaults>
</compile_context>

<pallas_src>
import jax
import jax.numpy as jnp
import numpy as np
from jax.experimental import pallas as pl
from jax.experimental.pallas import tpu as pltpu

LANE = 128


def partial_conv_kernel(x_ref, m_ref, w_ref, b_ref, out_ref, nm_ref):
    # x_ref : (C_in, L_pad)        f32   channels->sublanes, length->lanes
    # m_ref : (C_in, L_pad)        bf16 or f32 (0/1 mask)
    # w_ref : (C_out, K*C_in)      matmul dtype (bf16 default), im2col-flattened
    # b_ref : (C_out, 1)           f32
    # out_ref: (C_out, L_out_pad)  lane-dense (multiple of 128)
    # nm_ref : (1, L_out_pad)      single-row new_mask
    _, L_pad = x_ref.shape
    _, L_out_pad = out_ref.shape
    K = L_pad - L_out_pad + 1            # stride=1, padding=0, dilation=1

    m = m_ref[...].astype(jnp.float32)   # exact upcast (mask values are 0/1)
    xm = x_ref[...] * m                  # masked input, exact f32 on the VPU

    # im2col of the masked input only: K lane-shifted slices, rows ordered
    # (tap k, channel i) to match the wrapper's weight flattening.
    cols = jnp.concatenate([xm[:, k:k + L_out_pad] for k in range(K)], axis=0)

    # Single MXU matmul per grid step (bf16 operands by default, f32 acc).
    acc = jnp.dot(w_ref[...], cols.astype(w_ref.dtype),
                  preferred_element_type=jnp.float32)        # (C_out, L_out_pad)

    # msum = conv1d(mask, ones) computed off the MXU:
    # sublane (channel) reduce + K lane-shifted adds; exact integer-valued f32.
    mch = jnp.sum(m, axis=0, keepdims=True)                  # (1, L_pad)
    msum = mch[:, 0:L_out_pad]
    for k in range(1, K):
        msum = msum + mch[:, k:k + L_out_pad]                # (1, L_out_pad)

    holes = msum == 0.0                  # exact: 0/1 mask -> integer sums
    mask_sum = jnp.where(holes, 1.0, msum)
    # One reciprocal row, multiplied into the whole accumulator (C_out x fewer
    # divides).  approx=True + one Newton step would move this to the EUP slot.
    inv = pl.reciprocal(mask_sum)                            # (1, L_out_pad)

    out = jnp.where(holes, 0.0, acc * inv + b_ref[...])      # (C_out, L_out_pad)
    out_ref[...] = out.astype(out_ref.dtype)
    nm_ref[...] = jnp.where(holes, 0.0, 1.0).astype(nm_ref.dtype)


def partial_conv_pallas(x_ncl, mask_ncl, weight_oik, bias_o, *,
                        matmul_dtype=jnp.bfloat16,
                        mask_dtype=jnp.bfloat16,
                        broadcast_new_mask=True,
                        vmem_limit_bytes=None):
    """x_ncl, mask_ncl: (N, C_in, L); weight_oik: (C_out, C_in, K); bias_o: (C_out,).

    matmul_dtype : MXU operand dtype (bf16 default; f32 for exact conv).
    mask_dtype   : HBM dtype of the mask stream (bf16 is lossless for 0/1 masks).
    """
    N, C_in, L = x_ncl.shape
    C_out, _, K = weight_oik.shape
    L_out = L - K + 1                    # stride=1, padding=0, dilation=1
    F = K * C_in

    # Lane-dense output: pad L_out up to a multiple of 128, crop afterwards.
    L_out_pad = LANE * pl.cdiv(L_out, LANE)
    L_pad = L_out_pad + K - 1
    if L_pad != L:
        pad = ((0, 0), (0, 0), (0, L_pad - L))
        x_ncl = jnp.pad(x_ncl, pad)
        mask_ncl = jnp.pad(mask_ncl, pad)   # padded tail columns are cropped below

    mask_ncl = mask_ncl.astype(mask_dtype)

    # One-time weight glue (tiny): w_flat[o, k*C_in + i] = weight[o, i, k],
    # matching the in-kernel im2col row order.  No augmented ones-row.
    w_flat = jnp.transpose(weight_oik, (0, 2, 1)).reshape(C_out, F).astype(matmul_dtype)
    b_col = bias_o.reshape(C_out, 1).astype(jnp.float32)

    out_dtype = x_ncl.dtype
    out, nm = pl.pallas_call(
        partial_conv_kernel,
        out_shape=(
            jax.ShapeDtypeStruct((N, C_out, L_out_pad), out_dtype),
            jax.ShapeDtypeStruct((N, 1, L_out_pad), out_dtype),
        ),
        grid=(N,),
        in_specs=[
            pl.BlockSpec((None, C_in, L_pad), lambda n: (n, 0, 0)),
            pl.BlockSpec((None, C_in, L_pad), lambda n: (n, 0, 0)),
            pl.BlockSpec((C_out, F), lambda n: (0, 0)),
            pl.BlockSpec((C_out, 1), lambda n: (0, 0)),
        ],
        out_specs=[
            pl.BlockSpec((None, C_out, L_out_pad), lambda n: (n, 0, 0)),
            pl.BlockSpec((None, 1, L_out_pad), lambda n: (n, 0, 0)),
        ],
        compiler_params=pltpu.CompilerParams(
            dimension_semantics=("parallel",),      # shardable across TCs (v7x)
            vmem_limit_bytes=vmem_limit_bytes),     # raise when growing L tiles
    )(x_ncl, mask_ncl, w_flat, b_col)

    out = out[:, :, :L_out]
    nm = nm[:, :, :L_out]
    if broadcast_new_mask:
        # PyTorch module returns new_mask shaped like output; broadcast outside
        # the kernel so the kernel only writes one row per batch element.
        nm = jnp.broadcast_to(nm, out.shape)
    return out, nm


def partial_conv_ref(x_ncl, mask_ncl, weight_oik, bias_o):
    """Pure-JAX reference matching the PyTorch forward exactly."""
    dn = jax.lax.conv_dimension_numbers(x_ncl.shape, weight_oik.shape,
                                        ("NCH", "OIH", "NCH"))
    b = bias_o[None, :, None]
    out = jax.lax.conv_general_dilated(x_ncl * mask_ncl, weight_oik, (1,),
                                       "VALID", dimension_numbers=dn) + b
    out_mask = jax.lax.conv_general_dilated(mask_ncl, jnp.ones_like(weight_oik),
                                            (1,), "VALID", dimension_numbers=dn)
    holes = out_mask == 0.0
    mask_sum = jnp.where(holes, 1.0, out_mask)
    out_pre = (out - b) / mask_sum + b
    out = jnp.where(holes, 0.0, out_pre)
    new_mask = jnp.where(holes, 0.0, jnp.ones_like(out))
    return out, new_mask


if __name__ == "__main__":
    # Small shapes: N=2, in_channels_C = in_channels_M = 4, out_channels=8,
    # kernel_size=3, L=16 -> L_out = 14.
    N, C_in, C_out, K, L = 2, 4, 8, 3, 16

    key = jax.random.PRNGKey(0)
    kx, km, kw, kb = jax.random.split(key, 4)

    x = jax.random.normal(kx, (N, C_in, L), dtype=jnp.float32)
    mask = (jax.random.uniform(km, (N, C_in, L)) > 0.3).astype(jnp.float32)
    # carve out a fully-masked region so the "holes" branch is exercised
    mask = mask.at[:, :, 4:8].set(0.0)

    fan_in = C_in * K
    weight = jax.random.uniform(kw, (C_out, C_in, K), dtype=jnp.float32,
                                minval=-1.0, maxval=1.0) / np.sqrt(fan_in)
    bias = jax.random.uniform(kb, (C_out,), dtype=jnp.float32,
                              minval=-1.0, maxval=1.0) / np.sqrt(fan_in)

    out_ref_, nm_ref_ = partial_conv_ref(x, mask, weight, bias)

    # Default fast path: bf16 MXU operands + bf16 mask stream (new_mask and the
    # hole pattern stay exact; the conv incurs bf16 operand rounding).
    out, nm = partial_conv_pallas(x, mask, weight, bias)
    out, nm = jax.block_until_ready((out, nm))
    np.testing.assert_allclose(np.asarray(out), np.asarray(out_ref_),
                               rtol=2e-2, atol=2e-2)
    np.testing.assert_array_equal(np.asarray(nm), np.asarray(nm_ref_))

    # Exact f32 path: tight check against the PyTorch-equivalent reference.
    out32, nm32 = partial_conv_pallas(x, mask, weight, bias,
                                      matmul_dtype=jnp.float32,
                                      mask_dtype=jnp.float32)
    out32, nm32 = jax.block_until_ready((out32, nm32))
    np.testing.assert_allclose(np.asarray(out32), np.asarray(out_ref_),
                               rtol=1e-4, atol=1e-4)
    np.testing.assert_array_equal(np.asarray(nm32), np.asarray(nm_ref_))

    print("KERNEL_OK")
</pallas_src>

<mosaic_0001>
module attributes {stable_mosaic.version = 11 : i64} {
  func.func @partial_conv_kernel(%arg0: i32, %arg1: memref<1x4x130xf32, #tpu.memory_space<vmem>>, %arg2: memref<1x4x130xbf16, #tpu.memory_space<vmem>>, %arg3: memref<8x12xbf16, #tpu.memory_space<vmem>>, %arg4: memref<8x1xf32, #tpu.memory_space<vmem>>, %arg5: memref<1x8x128xf32, #tpu.memory_space<vmem>>, %arg6: memref<1x1x128xf32, #tpu.memory_space<vmem>>) attributes {dimension_semantics = [#tpu.dimension_semantics<parallel>], iteration_bounds = array<i64: 2>, scalar_prefetch = 0 : i64, scratch_operands = 0 : i64, tpu.core_type = #tpu.core_type<tc>, window_params = [{transform_indices = @transform_0, window_bounds = array<i64: 1, 4, 130>}, {transform_indices = @transform_1, window_bounds = array<i64: 1, 4, 130>}, {pipeline_mode = #tpu.pipeline_mode<synchronous>, transform_indices = @transform_2, window_bounds = array<i64: 8, 12>}, {pipeline_mode = #tpu.pipeline_mode<synchronous>, transform_indices = @transform_3, window_bounds = array<i64: 8, 1>}, {transform_indices = @transform_4, window_bounds = array<i64: 1, 8, 128>}, {transform_indices = @transform_5, window_bounds = array<i64: 1, 1, 128>}]} {
    %c0 = arith.constant 0 : index
    %c0_0 = arith.constant 0 : index
    %c0_1 = arith.constant 0 : index
    %0 = vector.load %arg2[%c0, %c0_0, %c0_1] : memref<1x4x130xbf16, #tpu.memory_space<vmem>>, vector<1x4x130xbf16>
    %1 = vector.shape_cast %0 : vector<1x4x130xbf16> to vector<4x130xbf16>
    %2 = arith.extf %1 : vector<4x130xbf16> to vector<4x130xf32>
    %c0_2 = arith.constant 0 : index
    %c0_3 = arith.constant 0 : index
    %c0_4 = arith.constant 0 : index
    %3 = vector.load %arg1[%c0_2, %c0_3, %c0_4] : memref<1x4x130xf32, #tpu.memory_space<vmem>>, vector<1x4x130xf32>
    %4 = vector.shape_cast %3 : vector<1x4x130xf32> to vector<4x130xf32>
    %5 = arith.mulf %4, %2 : vector<4x130xf32>
    %6 = vector.extract_strided_slice %5 {offsets = [0, 0], sizes = [4, 128], strides = [1, 1]} : vector<4x130xf32> to vector<4x128xf32>
    %7 = vector.extract_strided_slice %5 {offsets = [0, 1], sizes = [4, 128], strides = [1, 1]} : vector<4x130xf32> to vector<4x128xf32>
    %8 = vector.extract_strided_slice %5 {offsets = [0, 2], sizes = [4, 128], strides = [1, 1]} : vector<4x130xf32> to vector<4x128xf32>
    %9 = tpu.concatenate %6, %7, %8 in 0 : vector<4x128xf32>, vector<4x128xf32>, vector<4x128xf32> -> vector<12x128xf32>
    %c0_5 = arith.constant 0 : index
    %c0_6 = arith.constant 0 : index
    %10 = vector.load %arg3[%c0_5, %c0_6] : memref<8x12xbf16, #tpu.memory_space<vmem>>, vector<8x12xbf16>
    %11 = arith.truncf %9 : vector<12x128xf32> to vector<12x128xbf16>
    %cst = arith.constant dense<0.000000e+00> : vector<8x128xf32>
    %12 = tpu.matmul %10, %11, %cst {dimension_numbers = #tpu.dot_dimension_numbers<[1], [0], [0], [1], [0, 0, 1, 1], [], []>} : vector<8x12xbf16>, vector<12x128xbf16>, vector<8x128xf32> -> vector<8x128xf32>
    %cst_7 = arith.constant dense<0.000000e+00> : vector<130xf32>
    %13 = vector.multi_reduction <add>, %2, %cst_7 [0] : vector<4x130xf32> to vector<130xf32>
    %14 = vector.shape_cast %13 : vector<130xf32> to vector<1x130xf32>
    %15 = vector.extract_strided_slice %14 {offsets = [0, 0], sizes = [1, 128], strides = [1, 1]} : vector<1x130xf32> to vector<1x128xf32>
    %16 = vector.extract_strided_slice %14 {offsets = [0, 1], sizes = [1, 128], strides = [1, 1]} : vector<1x130xf32> to vector<1x128xf32>
    %17 = arith.addf %15, %16 : vector<1x128xf32>
    %18 = vector.extract_strided_slice %14 {offsets = [0, 2], sizes = [1, 128], strides = [1, 1]} : vector<1x130xf32> to vector<1x128xf32>
    %19 = arith.addf %17, %18 : vector<1x128xf32>
    %cst_8 = arith.constant 0.000000e+00 : f32
    %20 = vector.broadcast %cst_8 : f32 to vector<1x128xf32>
    %21 = arith.cmpf oeq, %19, %20 : vector<1x128xf32>
    %cst_9 = arith.constant 1.000000e+00 : f32
    %22 = vector.broadcast %cst_9 : f32 to vector<1x128xf32>
    %23 = arith.select %21, %22, %19 : vector<1x128xi1>, vector<1x128xf32>
    %24 = tpu.reciprocal %23 : vector<1x128xf32> -> vector<1x128xf32>
    %25 = vector.broadcast %24 : vector<1x128xf32> to vector<8x128xf32>
    %26 = arith.mulf %12, %25 : vector<8x128xf32>
    %c0_10 = arith.constant 0 : index
    %c0_11 = arith.constant 0 : index
    %27 = vector.load %arg4[%c0_10, %c0_11] : memref<8x1xf32, #tpu.memory_space<vmem>>, vector<8x1xf32>
    %28 = vector.broadcast %27 : vector<8x1xf32> to vector<8x128xf32>
    %29 = arith.addf %26, %28 : vector<8x128xf32>
    %cst_12 = arith.constant 0.000000e+00 : f32
    %30 = vector.shape_cast %21 : vector<1x128xi1> to vector<1x128xi1>
    %31 = vector.broadcast %30 : vector<1x128xi1> to vector<8x128xi1>
    %32 = vector.broadcast %cst_12 : f32 to vector<8x128xf32>
    %33 = arith.select %31, %32, %29 : vector<8x128xi1>, vector<8x128xf32>
    %c0_13 = arith.constant 0 : index
    %c0_14 = arith.constant 0 : index
    %c0_15 = arith.constant 0 : index
    %34 = vector.load %arg5[%c0_13, %c0_14, %c0_15] : memref<1x8x128xf32, #tpu.memory_space<vmem>>, vector<1x8x128xf32>
    %35 = vector.shape_cast %34 : vector<1x8x128xf32> to vector<8x128xf32>
    %36 = vector.shape_cast %33 : vector<8x128xf32> to vector<1x8x128xf32>
    tpu.vector_store %arg5[%c0_13, %c0_14, %c0_15], %36 {strides = array<i32>} : memref<1x8x128xf32, #tpu.memory_space<vmem>>, vector<1x8x128xf32>,
    %cst_16 = arith.constant 0.000000e+00 : f32
    %cst_17 = arith.constant 1.000000e+00 : f32
    %37 = vector.broadcast %cst_16 : f32 to vector<1x128xf32>
    %38 = vector.broadcast %cst_17 : f32 to vector<1x128xf32>
    %39 = arith.select %21, %37, %38 : vector<1x128xi1>, vector<1x128xf32>
    %c0_18 = arith.constant 0 : index
    %c0_19 = arith.constant 0 : index
    %c0_20 = arith.constant 0 : index
    %40 = vector.load %arg6[%c0_18, %c0_19, %c0_20] : memref<1x1x128xf32, #tpu.memory_space<vmem>>, vector<1x1x128xf32>
    %41 = vector.shape_cast %40 : vector<1x1x128xf32> to vector<1x128xf32>
    %42 = vector.shape_cast %39 : vector<1x128xf32> to vector<1x1x128xf32>
    tpu.vector_store %arg6[%c0_18, %c0_19, %c0_20], %42 {strides = array<i32>} : memref<1x1x128xf32, #tpu.memory_space<vmem>>, vector<1x1x128xf32>,
    return
  }
  func.func @transform_0(%arg0: i32) -> (i32, i32, i32) {
    %c0_i32 = arith.constant 0 : i32
    %c0_i32_0 = arith.constant 0 : i32
    %c0_i32_1 = arith.constant 0 : i32
    return %arg0, %c0_i32, %c0_i32_0 : i32, i32, i32
  }
  func.func @transform_1(%arg0: i32) -> (i32, i32, i32) {
    %c0_i32 = arith.constant 0 : i32
    %c0_i32_0 = arith.constant 0 : i32
    %c0_i32_1 = arith.constant 0 : i32
    return %arg0, %c0_i32, %c0_i32_0 : i32, i32, i32
  }
  func.func @transform_2(%arg0: i32) -> (i32, i32) {
    %c0_i32 = arith.constant 0 : i32
    %c0_i32_0 = arith.constant 0 : i32
    %c0_i32_1 = arith.constant 0 : i32
    return %c0_i32, %c0_i32_0 : i32, i32
  }
  func.func @transform_3(%arg0: i32) -> (i32, i32) {
    %c0_i32 = arith.constant 0 : i32
    %c0_i32_0 = arith.constant 0 : i32
    %c0_i32_1 = arith.constant 0 : i32
    return %c0_i32, %c0_i32_0 : i32, i32
  }
  func.func @transform_4(%arg0: i32) -> (i32, i32, i32) {
    %c0_i32 = arith.constant 0 : i32
    %c0_i32_0 = arith.constant 0 : i32
    %c0_i32_1 = arith.constant 0 : i32
    return %arg0, %c0_i32, %c0_i32_0 : i32, i32, i32
  }
  func.func @transform_5(%arg0: i32) -> (i32, i32, i32) {
    %c0_i32 = arith.constant 0 : i32
    %c0_i32_0 = arith.constant 0 : i32
    %c0_i32_1 = arith.constant 0 : i32
    return %arg0, %c0_i32, %c0_i32_0 : i32, i32, i32
  }
}

</mosaic_0001>

<bundles_post_ra>
// kernel: tpu_custom_call.1
= control target key start
LH: loop header
LB: loop body
LE: loop exit
PB: predicated region body
PF: predicated region fallthrough
CT: control target
= control target key end

     0   :  { %11 = vsyncpa [#allocation3], 0  ;;  %s1023_s0 = inlined_call_operand.hbm [shape: f32[2,4,130], index: 0, kind: input, shape index: {}]   ;;  %s1024_s1 = inlined_call_operand.vmem [shape: bf16[2,4,130], index: 1, kind: input, shape index: {}]   ;;  %s1025_s2 = inlined_call_operand.vmem [shape: bf16[8,12], index: 2, kind: input, shape index: {}]   ;;  %s1026_s3 = inlined_call_operand.vmem [shape: f32[8,1], index: 3, kind: input, shape index: {}]   ;;  %s1027_s4 = inlined_call_operand.hbm [shape: f32[2,8,128], index: 4, kind: output, shape index: {0}]   ;;  %s1028_s5 = inlined_call_operand.hbm [shape: f32[2,1,128], index: 5, kind: output, shape index: {1}]  }
   0x1   :  { %13 = vsyncpa [#allocation3 + $0x1], 0 }
   0x2   :  { %14 = vsyncpa [#allocation4], 0 }
   0x3   :  { %16 = vsyncpa [#allocation4 + $0x1], 0 }
   0x4   :  { %17 = vsyncpa [#allocation7], 0 }
   0x5   :  { %19 = vsyncpa [#allocation7 + $0x1], 0  ;;  %s811_s18 = smov 0   ;;  %s813_s19 = smov 0  }
   0x6   :  { %s815_s20 = smov 0   ;;  %s817_s21 = smov 0  }
   0x7 LB: > { %s832_s22 = sadd.s32 4294967295, %s770_s21   ;;  %s545_s23 = sadd.s32 4294967294, %s770_s21   ;;  %s770_s21 = sphi %s817_s21, %s1043_s21   ;;  %s766_s20 = sphi %s815_s20, %s1042_s20   ;;  %s762_s19 = sphi %s813_s19, %s1041_s19   ;;  %s758_s18 = sphi %s811_s18, %s1040_s18  }
   0x8   : > { %s836_s24 = sadd.s32 1, %s770_s21   ;;  %s32_s25 = sadd.s32 1, %s766_s20 }
   0x9   : > { %s29_s26 = ssub.s32 %s770_s21, %s836_s24  ;;  %p39_p0 = scmp.ne.s32.totalorder %s766_s20, %s762_s19 }
   0xa   : > { %p30_p1 = scmp.eq.s32.totalorder %s29_s26, 0  ;;  %p40_p2 = scmp.eq.s32.totalorder %s770_s21, 0 }
   0xb   : > { %p45_p3 = scmp.ne.s32.totalorder %s762_s19, %s758_s18  ;;  %p46_p4 = scmp.eq.s32.totalorder %s832_s22, 0 }
   0xc   : > { %s848_s27 = scalar_select %p30_p1, %s766_s20, %s32_s25  }
   0xd   : > { %p850_p5 = por %p40_p2, %p39_p0  ;;  %p854_p6 = por %p46_p4, %p45_p3 }
   0xe   : > { %p137_p7 = scmp.eq.s32.totalorder %s832_s22, 1  ;;  %p143_p8 = scmp.eq.s32.totalorder %s545_s23, 1 }
   0xf   : > { %p589_p10 = scmp.lt.s32.totalorder %s770_s21, 2  ;;  %s195_s7 = sand.u32 1, %s766_s20  }
  0x10   : > { %p861_p11 = por %p137_p7, %p39_p0  ;;  %p865_p12 = por %p143_p8, %p45_p3 }
  0x11   : > { %s562_s8 = sshll.u32 %s770_s21, 7  ;;  %s548_s9 = sshll.u32 %s195_s7, 3 }
  0x12   : > { %s1032_s30 = scalar_select %p861_p11, 1, 0 }
  0x13   : > { %s1033_s6 = scalar_select %p865_p12, 1, 0 }
  0x14   : > { %s874_s12 = scalar_lea.hbm %s1023_s0, %s562_s8  ;;  %s199_s13 = scalar_lea.vmem [#allocation2], %s548_s9 }
  0x15   : > { %s207_s14 = sshll.u32 %s199_s13, 4  ;;  %p878_p13 = pnand %p589_p10, %p850_p5  ;;  %s882_s14 = int_to_ptr.vmem [resolvable:$true] %s207_s14 }
  0x16   : > { %s196_s16 = scalar_lea.sflag [#allocation3], %s195_s7  ;;  %s642_s17 = scalar_lea.hbm %s874_s12, 128 }
  0x17   : > { %p643_p2 = scmp.ne.s32.totalorder %s874_s12, %s642_s17  ;;  %p644_p3 = pneg %p878_p13 }
  0x18   : > { %s647_s26 = scalar_lea.hbm %s1023_s0, 256  ;;  %p648_p5 = scmp.lt.u32.totalorder %s874_s12, %s1023_s0 }
  0x19   : > { %p645_p4 = pnand %p644_p3, %p643_p2  ;;  %p649_p8 = scmp.lt.u32.totalorder %s647_s26, %s642_s17 }
  0x1a   : > { %p651_p9 = scmp.lt.u32.totalorder %s642_s17, %s874_s12 }
  0x1b   : > { %p646_p7 = pneg %p645_p4  ;;  %p650_p10 = por %p649_p8, %p648_p5 }
  0x1d   : > { %p652_p0 = por %p651_p9, %p650_p10 }
  0x1f   : > { %p653_p1 = pnand %p652_p0, %p646_p7 }
  0x21   : > { %656 = shalt.err (!%p653_p1)
}
  0x22   : > { %s657_s7 = scalar_lea.vmem %s882_s14, 128  ;;  %s772_s9 = smov [#allocation2]  }
  0x23   : > { %p658_p2 = scmp.ne.s32.totalorder %s882_s14, %s657_s7  ;;  %s662_s10 = sshll.u32 %s772_s9, 4  ;;  %s663_s10 = int_to_ptr.vmem [resolvable:$false] %s662_s10 }
  0x24   : > { %s664_s11 = scalar_lea.vmem %s663_s10, 256  ;;  %p665_p11 = scmp.lt.s32.totalorder %s882_s14, %s663_s10 }
  0x25   : > { %p660_p4 = pnand %p658_p2, %p644_p3  ;;  %p666_p5 = scmp.lt.s32.totalorder %s664_s11, %s657_s7 }
  0x27   : > { %p661_p12 = pneg %p660_p4  ;;  %p667_p8 = por %p666_p5, %p665_p11 }
  0x29   : > { %p668_p9 = pnand %p667_p8, %p661_p12 }
  0x2b   : > { %671 = shalt.err (!%p668_p9)
}
  0x2c   : > { %581 = dma.hbm_to_vmem [thread:$0]  (!%p878_p13), %s874_s12, 128, %s882_s14, %s196_s16  }
  0x2d   : > { %p1035_p0 = scmp.lt.s32.totalorder %s770_s21, 3  ;;  %p1036_p1 = scmp.ge.s32.totalorder %s770_s21, 1 }
  0x2f   : > { %p221_p3 = pnand %p1036_p1, %p1035_p0 }
  0x30   : > { %s916_s13 = sand.u32 (!%p221_p3), 1, %s762_s19  }
  0x31   : > { %224 = sbr.rel (%p221_p3) target bundleno = 431 (0x1af), region = 36  ;;  %s552_s17 = sshll.u32 (!%p221_p3), %s916_s13, 3 }
  0x32   : > { %s227_s23 = scalar_lea.sflag (!%p221_p3), [#allocation3], %s916_s13  ;;  %s230_s15 = scalar_lea.vmem (!%p221_p3), [#allocation2], %s552_s17 }
  0x38   : > { %745 = dma.done.wait (%p854_p6), %s227_s23, 128  }
  0x39   : > { %747 = vsyncadd (%p854_p6), %s227_s23, 4294967168  ;;  %p266_p11 = scmp.lt.s32.totalorder %s832_s22, 1  ;;  %v274_v1 = vld [vmem:[%s230_s15] sm:$0xff]  ;;  %v773_v3 = vmov 0.0   ;;  %vm293_vm0 = vcmask 1043456   ;;  %vm774_vm1 = vmmov 0  }
  0x3a   : > { %566 = vmatprep.subr.bf16.mxu0 %v773_v3  ;;  %568 = vmatprep.mubr.msk.bf16.mxu0 %vm774_vm1, %v773_v3  ;;  %s775_s29 = smov 127   ;;  %vm355_vm2 = vcmask 11264   ;;  %v776_v13 = vmov 0   ;;  %s777_s28 = smov 126   ;;  %v387_v24 = vld [vmem:[%s1026_s3] sm:$0xff]  ;;  %vm282_vm3 = vcmask 1039360  }
  0x3b   : > { %s267_s12 = scalar_select %p266_p11, %s832_s22, 1  ;;  %639 = vset.pattern.permute.xlu0 %v776_v13  ;;  %vm290_vm4 = vcmask 1031168   ;;  %vm301_vm5 = vcmask 1045504   ;;  %v295_v38 = vld [vmem:[%s1025_s2] sm:$0xf]  ;;  %vm297_vm6 = vcmask 97280  }
  0x3c   : > { %v778_v47 = vmov 1.0   ;;  %s265_s11 = scalar_lea.vmem [#allocation6], %s916_s13  ;;  %s559_s23 = sshll.u32 %s832_s22, 4 }
  0x3d   : > { %s563_s14 = sshll.u32 %s267_s12, 2  ;;  %s435_s15 = sshll.u32 %s265_s11, 4  ;;  %s436_s15 = int_to_ptr.vmem [resolvable:$true] %s435_s15 }
  0x3e   : > { %s270_s26 = scalar_lea.vmem %s1024_s1, %s563_s14  ;;  %s951_s16 = scalar_lea.hbm %s1028_s5, %s559_s23 }
  0x3f   : > { %v272_v0 = vld [vmem:[%s270_s26] sm:$0xf]  ;;  %s410_s25 = scalar_lea.sflag [#allocation7], %s916_s13  ;;  %s672_s26 = scalar_lea.vmem %s436_s15, 16 }
  0x40   : > { %v273_v2 = vunpack.c.l.bf16 %v272_v0  ;;  %p673_p6 = scmp.ne.s32.totalorder %s436_s15, %s672_s26  ;;  %p1037_p12 = scmp.ne.s32.totalorder %s1032_s30, 0 }
  0x42   : > { %v275_v4 = vmul.f32 %v274_v1, %v273_v2  ;;  %v348_v7 = vsel %vm293_vm0, %v273_v2, 0.0  ;;  %v346_v12 = vcombine.high %v273_v2, %v273_v2  ;;  %p674_p13 = pnand %p673_p6, %p1037_p12 }
  0x43   : > { %v349_v9 = vrot.slane %v348_v7, 4 }
  0x44   : > { %v277_v5 = vcombine.low %v275_v4, %v275_v4  ;;  %v285_v6 = vcombine.high %v275_v4, %v275_v4  ;;  %v356_v15 = vsel %vm355_vm2, %v346_v12, 0.0  ;;  %p675_p7 = pneg %p674_p13 }
  0x45   : > { %v350_v11 = vadd.f32 %v349_v9, %v348_v7  ;;  %v357_v16 = vrot.slane %v356_v15, 4 }
  0x46   : > { %v629_v8 = vpack.i.bf16 %v275_v4, %v277_v5  ;;  %v634_v10 = vpack.i.bf16 %v285_v6, %v275_v4 }
  0x47   : > { %v351_v14 = vrot.slane %v350_v11, 2  ;;  %v358_v18 = vadd.f32 %v357_v16, %v356_v15 }
  0x48   : > { %630 = vrot.lane.b32.xlu0 %v629_v8, %s775_s29 }
  0x49   : > { %v352_v17 = vadd.f32 %v351_v14, %v350_v11  ;;  %v359_v20 = vrot.slane %v358_v18, 2 }
  0x4b   : > { %v353_v19 = vrot.slane %v352_v17, 1  ;;  %v360_v22 = vadd.f32 %v359_v20, %v358_v18 }
  0x4c   : > { %635 = vrot.lane.b32.xlu0 %v634_v10, %s777_s28 }
  0x4d   : > { %v354_v21 = vadd.f32 %v353_v19, %v352_v17  ;;  %v361_v23 = vrot.slane %v360_v22, 1 }
  0x4f   : > { %365 = vrot.lane.b32.xlu1 %v354_v21, %s775_s29  ;;  %v362_v25 = vadd.f32 %v361_v23, %v360_v22 }
  0x50   : > { %372 = vrot.lane.b32.xlu0 %v354_v21, %s777_s28 }
  0x53   : > { %367 = vrot.lane.b32.xlu1 %v362_v25, %s775_s29  ;;  %s779_s29 = smov [#allocation6]  }
  0x54   : > { %390 = vperm.xlu0 %639, %v387_v24  }
  0x57   : > { %374 = vrot.lane.b32.xlu1 %v362_v25, %s777_s28  ;;  %s676_s28 = sshll.u32 %s779_s29, 4  ;;  %s677_s28 = int_to_ptr.vmem [resolvable:$false] %s676_s28 }
  0x58   : > { %s678_s8 = scalar_lea.vmem %s677_s28, 32  ;;  %p679_p10 = scmp.lt.s32.totalorder %s436_s15, %s677_s28 }
  0x59   : > { %p680_p2 = scmp.lt.s32.totalorder %s678_s8, %s672_s26 }
  0x5b   : > { %p681_p4 = por %p680_p2, %p679_p10 }
  0x5d   : > { %p682_p5 = pnand %p681_p4, %p675_p7 }
  0xba   : > { %v631_v26 = vpop.permute.xlu0 %630 }
  0xbb   : > { %v633_v27 = vunpack.i.h.bf16 %v631_v26  ;;  %v632_v28 = vunpack.i.l.bf16 %v631_v26 }
  0xbd   : > { %v283_v30 = vsel %vm282_vm3, %v632_v28, %v633_v27 }
  0xbe   : > { %v636_v29 = vpop.permute.xlu0 %635  ;;  %v294_v34 = vsel %vm293_vm0, %v275_v4, %v283_v30 }
  0xbf   : > { %v638_v31 = vunpack.i.h.bf16 %v636_v29  ;;  %v637_v32 = vunpack.i.l.bf16 %v636_v29 }
  0xc1   : > { %v291_v33 = vsel %vm290_vm4, %v637_v32, %v638_v31  ;;  %v366_v37 = vpop.permute.xlu1 %365 }
  0xc2   : > { %v296_v35 = vpack.c.bf16 %v291_v33, %v294_v34  ;;  %v373_v42 = vpop.permute.xlu0 %372 }
  0xc4   : > { %v303_v36 = vsel %vm301_vm5, %v296_v35, 0 }
  0xc5   : > { %567 = vmatpush3.bf16.msra.mxu0 %v303_v36  ;;  %v368_v39 = vpop.permute.xlu1 %367 }
  0xc6   : > { %v369_v40 = vsel %vm282_vm3, %v366_v37, %v368_v39 }
  0xc7   : > { %v371_v41 = vadd.f32 %v369_v40, %v354_v21 }
  0xc8   : > { %569 = vmatmul.mubr.msk.bf16.vlgmr.msra.gmra.mrb[0].mxu0 %vm297_vm6, %v295_v38 }
  0xc9   : > { %v375_v43 = vpop.permute.xlu1 %374 }
  0xca   : > { %v376_v44 = vsel %vm290_vm4, %v373_v42, %v375_v43 }
  0xcb   : > { %v378_v45 = vadd.f32 %v376_v44, %v371_v41 }
  0xcd   : > { %vm379_vm7 = vcmp.eq.f32.partialorder %v378_v45, 0.0 }
  0xce   : > { %v380_v46 = vsel %vm379_vm7, 1.0, %v378_v45  ;;  %v402_v48 = vsel %vm379_vm7, 0.0, %v778_v47 }
  0xcf   : > { %403 = vst [vmem:[%s265_s11] sm:$0x1] %v402_v48 }
  0xd0   : > { %685 = shalt.err (!%p682_p5)
}
  0xd1   : > { %s686_s7 = scalar_lea.hbm %s951_s16, 16  ;;  %s690_s11 = scalar_lea.hbm %s1028_s5, 32 }
  0xd2   : > { %p687_p8 = scmp.ne.s32.totalorder %s951_s16, %s686_s7  ;;  %p691_p1 = scmp.lt.u32.totalorder %s951_s16, %s1028_s5 }
  0xd3   : > { %p692_p3 = scmp.lt.u32.totalorder %s690_s11, %s686_s7  ;;  %p694_p6 = scmp.lt.u32.totalorder %s686_s7, %s951_s16 }
  0xd4   : > { %p688_p9 = pnand %p687_p8, %p1037_p12 }
  0xd5   : > { %p693_p11 = por %p692_p3, %p691_p1 }
  0xd6   : > { %p689_p0 = pneg %p688_p9 }
  0xd7   : > { %p695_p13 = por %p694_p6, %p693_p11 }
  0xd9   : > { %p696_p7 = pnand %p695_p13, %p689_p0 }
  0xdb   : > { %699 = shalt.err (!%p696_p7)
}
  0xdc   : > { %575 = dma.vmem_to_hbm [thread:$0]  (%p1037_p12), %s436_s15, 16, %s951_s16, %s410_s25   ;;  %640 = vrcp.f32 %v380_v46  ;;  %v382_v49 = vlaneseq  ;;  %v394_v53 = vsel %vm379_vm7, 1, %v776_v13  ;;  %v391_v57 = vpop.permute.xlu0 %390 }
  0xdd   : > { %s558_s14 = sshll.u32 %s832_s22, 7  ;;  %s259_s26 = scalar_lea.vmem [#allocation5], %s552_s17 }
  0xde   : > { %v383_v50 = vshrl.u32 %v382_v49, 7  ;;  %s422_s15 = sshll.u32 %s259_s26, 4  ;;  %s979_s29 = scalar_lea.hbm %s1027_s4, %s558_s14  ;;  %s981_s15 = int_to_ptr.vmem [resolvable:$true] %s422_s15 }
  0xdf   : > { %s405_s22 = scalar_lea.sflag [#allocation4], %s916_s13  ;;  %s700_s28 = scalar_lea.vmem %s981_s15, 128 }
  0xe0   : > { %v384_v52 = vsub.s32 0, %v383_v50  ;;  %p701_p10 = scmp.ne.s32.totalorder %s981_s15, %s700_s28  ;;  %s780_s17 = smov [#allocation5]  }
  0xe1   : > { %s704_s8 = sshll.u32 %s780_s17, 4  ;;  %s705_s8 = int_to_ptr.vmem [resolvable:$false] %s704_s8 }
  0xe2   : > { %v398_v56 = vrot.slane %v394_v53, %v384_v52  ;;  %p702_p2 = pnand %p701_p10, %p1037_p12  ;;  %s706_s7 = scalar_lea.vmem %s705_s8, 256 }
  0xe3   : > { %p707_p5 = scmp.lt.s32.totalorder %s981_s15, %s705_s8  ;;  %p708_p8 = scmp.lt.s32.totalorder %s706_s7, %s700_s28 }
  0xe4   : > { %vm399_vm8 = vcmp.eq.s32.totalorder %v398_v56, 1  ;;  %p703_p4 = pneg %p702_p2 }
  0xe5   : > { %p709_p9 = por %p708_p8, %p707_p5 }
  0xe6   : > { %v641_v51 = vpop.eup %640 }
  0xe7   : > { %v385_v54 = vrot.slane %v641_v51, %v384_v52  ;;  %p710_p0 = pnand %p709_p9, %p703_p4 }
 0x19b   : > { %v339_v55 = vpop.f32.mrb[0].mxu0 }
 0x19c   : > { %v386_v58 = vmul.f32 %v385_v54, %v339_v55  ;;  %v570_v59 = vpop.f32.mrb[1].mxu0 }
 0x19d   : > { %v342_v60 = vpop.f32.mrb[2].mxu0 }
 0x19e   : > { %v393_v61 = vadd.f32 %v391_v57, %v386_v58  ;;  %v571_v62 = vpop.f32.mrb[3].mxu0 }
 0x1a0   : > { %v400_v63 = vsel %vm399_vm8, 0.0, %v393_v61 }
 0x1a1   : > { %401 = vst [vmem:[%s259_s26] sm:$0xff] %v400_v63 }
 0x1a2   : > { %713 = shalt.err (!%p710_p0)
}
 0x1a3   : > { %s714_s13 = scalar_lea.hbm %s979_s29, 128  ;;  %s718_s11 = scalar_lea.hbm %s1027_s4, 256 }
 0x1a4   : > { %p715_p1 = scmp.ne.s32.totalorder %s979_s29, %s714_s13  ;;  %p719_p6 = scmp.lt.u32.totalorder %s979_s29, %s1027_s4 }
 0x1a5   : > { %p720_p13 = scmp.lt.u32.totalorder %s718_s11, %s714_s13  ;;  %p722_p10 = scmp.lt.u32.totalorder %s714_s13, %s979_s29 }
 0x1a6   : > { %p716_p3 = pnand %p715_p1, %p1037_p12 }
 0x1a7   : > { %p721_p7 = por %p720_p13, %p719_p6 }
 0x1a8   : > { %p717_p11 = pneg %p716_p3 }
 0x1a9   : > { %p723_p2 = por %p722_p10, %p721_p7 }
 0x1ab   : > { %p724_p4 = pnand %p723_p2, %p717_p11 }
 0x1ad   : > { %727 = shalt.err (!%p724_p4)
}
 0x1ae   : > { %574 = dma.vmem_to_hbm [thread:$0]  (%p1037_p12), %s981_s15, 128, %s979_s29, %s405_s22  }
 0x1af PF: > { %s447_s14 = sand.u32 1, %s758_s18   ;;  %p1038_p5 = scmp.ne.s32.totalorder %s1033_s6, 0 }
 0x1b0   : > { %p1039_p8 = scmp.ge.s32.totalorder %s770_s21, 2  ;;  %s448_s26 = scalar_lea.sflag [#allocation4], %s447_s14 }
 0x1b2   : > { %p583_p9 = pnand %p1039_p8, %p1038_p5 }
 0x1b4   : > { %749 = dma.done.wait (!%p583_p9), %s448_s26, 128  }
 0x1b5   : > { %751 = vsyncadd (!%p583_p9), %s448_s26, 4294967168  ;;  %s457_s16 = scalar_lea.sflag [#allocation7], %s447_s14 }
 0x1b6   : > { %753 = dma.done.wait (!%p583_p9), %s457_s16, 16  }
 0x1b7   : > { %755 = vsyncadd (!%p583_p9), %s457_s16, 4294967280  ;;  %p22_p12 = scmp.ge.s32.totalorder %s836_s24, 4   ;;  %s1040_s18 = smov %s762_s19 }
 0x1b8   : > { %s1041_s19 = smov %s766_s20  ;;  %s1042_s20 = smov %s848_s27 }
 0x1b9   : > { %s1043_s21 = smov %s836_s24  ;;  %24 = sbr.rel (!%p22_p12) target bundleno = 7 (0x7), region = 101 }
 0x1c0   :  { %461 = vsyncpa [#allocation3], 1 }
 0x1c1   :  { %463 = vsyncpa [#allocation3 + $0x1], 1 }
 0x1c2   :  { %464 = vsyncpa [#allocation4], 1 }
 0x1c3   :  { %466 = vsyncpa [#allocation4 + $0x1], 1 }
 0x1c4   :  { %467 = vsyncpa [#allocation7], 1 }
 0x1c5   :  { %469 = vsyncpa [#allocation7 + $0x1], 1 }

</bundles_post_ra>
